<compile_context>
chip_gen: v7x
topology: tpu7x:2x2x1
jax: 0.10.0
libtpu: 0.0.40
codegen_flags: <defaults>
</compile_context>

<pallas_src>
import functools

import jax
import jax.numpy as jnp
from jax.experimental import pallas as pl
from jax.experimental.pallas import tpu as pltpu

NEG_SLOPE = 0.01  # torch.nn.LeakyReLU default negative_slope
HIDDEN = 64


def _leaky_relu(x):
    # max(x, a*x) is exact for a < 1 and cheaper than cmp + select
    return jnp.maximum(x, NEG_SLOPE * x)


def _elementwise_dtype():
    """bf16 element-wise math on chips with bf16 VALUs (v6e/v7x), f32 otherwise."""
    try:
        kind = jax.devices()[0].device_kind.lower()
    except Exception:
        return jnp.float32
    if any(v in kind for v in ("v2", "v3", "v4", "v5")):
        return jnp.float32  # no bf16 VPU/EUP on these chips
    return jnp.bfloat16


def intensity_map_kernel(x_ref,
                         w1_ref, b1_ref,
                         w2_ref, b2_ref,
                         w3_ref, b3_ref,
                         w4_ref, b4_ref,
                         o_ref, *, ew_dtype):
    # x_ref: (1, TN) lane-dense pixel tile; weights resident in VMEM (b4 in SMEM).
    x = x_ref[...].astype(jnp.float32)                                 # (1, TN) for residual
    xc = x.astype(ew_dtype)

    # Layer 1 (1 -> 64): rank-1 broadcast multiply-add on the VPU.
    h = _leaky_relu(w1_ref[...] * xc + b1_ref[...])                    # (64, TN) ew_dtype

    # Layers 2 & 3 (64 -> 64): MXU matmuls (bf16 operands, f32 accumulation),
    # bias + LeakyReLU epilogues in ew_dtype.
    h = jnp.dot(w2_ref[...], h.astype(jnp.bfloat16),
                preferred_element_type=jnp.float32)                    # (64, TN) f32
    h = _leaky_relu(h.astype(ew_dtype) + b2_ref[...])

    h = jnp.dot(w3_ref[...], h.astype(jnp.bfloat16),
                preferred_element_type=jnp.float32)                    # (64, TN) f32
    h = _leaky_relu(h.astype(ew_dtype) + b3_ref[...])

    # Layer 4 (64 -> 1): contraction on the (otherwise idle) MXU; w4 is (1, 64).
    y = jnp.dot(w4_ref[...], h.astype(jnp.bfloat16),
                preferred_element_type=jnp.float32)                    # (1, TN) f32
    y = y + b4_ref[0]

    # residual: x + net(x), in f32, cast once on store
    o_ref[...] = (x + y).astype(o_ref.dtype)


def _init_params(key):
    """Deterministic init mimicking PyTorch Conv2d default (U(+-1/sqrt(fan_in))).

    Canonical f32 layout (used by the reference):
      w1: (64, 1)   b1: (64,)
      w2: (64, 64)  b2: (64,)
      w3: (64, 64)  b3: (64,)
      w4: (1, 64)   b4: (1,)
    """
    def conv_init(key, c_in, shape_w, shape_b):
        kw, kb = jax.random.split(key)
        bound = 1.0 / float(c_in) ** 0.5  # fan_in = c_in * 1 * 1
        w = jax.random.uniform(kw, shape_w, jnp.float32, -bound, bound)
        b = jax.random.uniform(kb, shape_b, jnp.float32, -bound, bound)
        return w, b

    k1, k2, k3, k4 = jax.random.split(key, 4)
    w1, b1 = conv_init(k1, 1, (HIDDEN, 1), (HIDDEN,))
    w2, b2 = conv_init(k2, HIDDEN, (HIDDEN, HIDDEN), (HIDDEN,))
    w3, b3 = conv_init(k3, HIDDEN, (HIDDEN, HIDDEN), (HIDDEN,))
    w4, b4 = conv_init(k4, HIDDEN, (1, HIDDEN), (1,))
    return (w1, b1, w2, b2, w3, b3, w4, b4)


def intensity_map_forward(x_nchw, params, *, tile_n=16384):
    """x_nchw: (N, 1, H, W) -> (N, 1, H, W), y = x + MLP(x) per pixel."""
    n, c, h, w = x_nchw.shape
    assert c == 1, "IntensityMap expects a single input channel"
    p = n * h * w

    ew_dtype = _elementwise_dtype()

    (w1, b1, w2, b2, w3, b3, w4, b4) = params
    # Pre-cast / reshape parameters once in the wrapper: MXU operands in bf16,
    # element-wise operands in ew_dtype, b4 as an SMEM f32 scalar.
    w1k = w1.astype(ew_dtype)                        # (64, 1)
    b1k = b1.reshape(HIDDEN, 1).astype(ew_dtype)     # (64, 1)
    w2k = w2.astype(jnp.bfloat16)                    # (64, 64)
    b2k = b2.reshape(HIDDEN, 1).astype(ew_dtype)     # (64, 1)
    w3k = w3.astype(jnp.bfloat16)                    # (64, 64)
    b3k = b3.reshape(HIDDEN, 1).astype(ew_dtype)     # (64, 1)
    w4k = w4.astype(jnp.bfloat16)                    # (1, 64)
    b4k = b4.astype(jnp.float32)                     # (1,)  -> SMEM

    # channels-major, pixels on lanes (free reshape since C == 1)
    x_flat = x_nchw.reshape(1, p)

    # Lane-dense tile, multiple of 128.  The kernel is compute-bound, so large
    # tiles amortize the ~0.35 us per-grid-step overhead.  If one tile would
    # swallow all pixels, halve it so the "parallel" axis has >= 2 steps and
    # both TensorCores get work on v7x.
    p128 = pl.cdiv(p, 128) * 128
    tn = min(tile_n, p128)
    if p128 >= 256 and tn >= p128:
        tn = pl.cdiv(p128 // 2, 128) * 128
    p_pad = pl.cdiv(p, tn) * tn
    if p_pad != p:
        # Padded pixels are computed and sliced off afterwards.
        x_flat = jnp.pad(x_flat, ((0, 0), (0, p_pad - p)))

    const = lambda shape: pl.BlockSpec(shape, lambda i: (0, 0))  # weights stay resident
    kernel = functools.partial(intensity_map_kernel, ew_dtype=ew_dtype)

    out_flat = pl.pallas_call(
        kernel,
        out_shape=jax.ShapeDtypeStruct((1, p_pad), x_nchw.dtype),
        grid_spec=pltpu.PrefetchScalarGridSpec(
            num_scalar_prefetch=0,
            grid=(p_pad // tn,),
            in_specs=[
                pl.BlockSpec((1, tn), lambda i: (0, i)),             # x tile (lane-dense)
                const((HIDDEN, 1)), const((HIDDEN, 1)),              # w1, b1
                const((HIDDEN, HIDDEN)), const((HIDDEN, 1)),         # w2, b2
                const((HIDDEN, HIDDEN)), const((HIDDEN, 1)),         # w3, b3
                const((1, HIDDEN)),                                  # w4 (1, 64)
                pl.BlockSpec(memory_space=pltpu.MemorySpace.SMEM),   # b4 scalar
            ],
            out_specs=pl.BlockSpec((1, tn), lambda i: (0, i)),
        ),
        compiler_params=pltpu.CompilerParams(
            dimension_semantics=("parallel",),        # shard grid steps across TCs (v7x)
            vmem_limit_bytes=48 * 1024 * 1024),       # above v5e/v6e scoped defaults
    )(x_flat, w1k, b1k, w2k, b2k, w3k, b3k, w4k, b4k)

    out = out_flat[:, :p] if p_pad != p else out_flat
    return out.reshape(n, c, h, w)


def _reference(x_nchw, params):
    """Pure-f32 reference matching the PyTorch module semantics."""
    (w1, b1, w2, b2, w3, b3, w4, b4) = params
    n, c, h, w = x_nchw.shape
    x = x_nchw.reshape(1, n * h * w).astype(jnp.float32)   # (1, P) channels-major
    t = _leaky_relu(w1 @ x + b1[:, None])
    t = _leaky_relu(w2 @ t + b2[:, None])
    t = _leaky_relu(w3 @ t + b3[:, None])
    y = w4 @ t + b4[:, None]
    return (x + y).reshape(n, c, h, w).astype(x_nchw.dtype)


if __name__ == "__main__":
    key = jax.random.PRNGKey(0)
    k_param, k_x = jax.random.split(key)

    params = _init_params(k_param)
    x = jax.random.normal(k_x, (2, 1, 16, 16), jnp.float32)  # NCHW, single channel

    out = intensity_map_forward(x, params)
    out = jax.block_until_ready(out)

    ref = _reference(x, params)
    assert out.shape == x.shape and out.dtype == x.dtype
    # Hidden layers run on the MXU in bf16 (f32 accumulation) and, on v6e/v7x,
    # the element-wise chain is bf16 too -> relaxed tolerance vs. the f32
    # reference; the residual add itself stays in f32.
    assert jnp.allclose(out, ref, atol=1e-1, rtol=1e-1), float(
        jnp.max(jnp.abs(out - ref)))

    print("KERNEL_OK")
</pallas_src>

<mosaic_0001>
module attributes {stable_mosaic.version = 11 : i64} {
  func.func @intensity_map_kernel(%arg0: i32, %arg1: memref<1x256xf32, #tpu.memory_space<vmem>>, %arg2: memref<64x1xbf16, #tpu.memory_space<vmem>>, %arg3: memref<64x1xbf16, #tpu.memory_space<vmem>>, %arg4: memref<64x64xbf16, #tpu.memory_space<vmem>>, %arg5: memref<64x1xbf16, #tpu.memory_space<vmem>>, %arg6: memref<64x64xbf16, #tpu.memory_space<vmem>>, %arg7: memref<64x1xbf16, #tpu.memory_space<vmem>>, %arg8: memref<1x64xbf16, #tpu.memory_space<vmem>>, %arg9: memref<1xf32, #tpu.memory_space<smem>>, %arg10: memref<1x256xf32, #tpu.memory_space<vmem>>) attributes {dimension_semantics = [#tpu.dimension_semantics<parallel>], iteration_bounds = array<i64: 2>, scalar_prefetch = 0 : i64, scratch_operands = 0 : i64, tpu.core_type = #tpu.core_type<tc>, window_params = [{transform_indices = @transform_0, window_bounds = array<i64: 1, 256>}, {pipeline_mode = #tpu.pipeline_mode<synchronous>, transform_indices = @transform_1, window_bounds = array<i64: 64, 1>}, {pipeline_mode = #tpu.pipeline_mode<synchronous>, transform_indices = @transform_2, window_bounds = array<i64: 64, 1>}, {pipeline_mode = #tpu.pipeline_mode<synchronous>, transform_indices = @transform_3, window_bounds = array<i64: 64, 64>}, {pipeline_mode = #tpu.pipeline_mode<synchronous>, transform_indices = @transform_4, window_bounds = array<i64: 64, 1>}, {pipeline_mode = #tpu.pipeline_mode<synchronous>, transform_indices = @transform_5, window_bounds = array<i64: 64, 64>}, {pipeline_mode = #tpu.pipeline_mode<synchronous>, transform_indices = @transform_6, window_bounds = array<i64: 64, 1>}, {pipeline_mode = #tpu.pipeline_mode<synchronous>, transform_indices = @transform_7, window_bounds = array<i64: 1, 64>}, {transform_indices = @transform_8, window_bounds = array<i64: 1>}, {transform_indices = @transform_9, window_bounds = array<i64: 1, 256>}]} {
    %c0 = arith.constant 0 : index
    %c0_0 = arith.constant 0 : index
    %0 = vector.load %arg1[%c0, %c0_0] : memref<1x256xf32, #tpu.memory_space<vmem>>, vector<1x256xf32>
    %1 = arith.truncf %0 : vector<1x256xf32> to vector<1x256xbf16>
    %c0_1 = arith.constant 0 : index
    %c0_2 = arith.constant 0 : index
    %2 = vector.load %arg2[%c0_1, %c0_2] : memref<64x1xbf16, #tpu.memory_space<vmem>>, vector<64x1xbf16>
    %3 = vector.broadcast %2 : vector<64x1xbf16> to vector<64x256xbf16>
    %4 = vector.broadcast %1 : vector<1x256xbf16> to vector<64x256xbf16>
    %5 = arith.mulf %3, %4 : vector<64x256xbf16>
    %c0_3 = arith.constant 0 : index
    %c0_4 = arith.constant 0 : index
    %6 = vector.load %arg3[%c0_3, %c0_4] : memref<64x1xbf16, #tpu.memory_space<vmem>>, vector<64x1xbf16>
    %7 = vector.broadcast %6 : vector<64x1xbf16> to vector<64x256xbf16>
    %8 = arith.addf %5, %7 : vector<64x256xbf16>
    %cst = arith.constant 1.000980e-02 : bf16
    %9 = vector.broadcast %cst : bf16 to vector<64x256xbf16>
    %10 = arith.mulf %9, %8 : vector<64x256xbf16>
    %11 = arith.maximumf %8, %10 : vector<64x256xbf16>
    %c0_5 = arith.constant 0 : index
    %c0_6 = arith.constant 0 : index
    %12 = vector.load %arg4[%c0_5, %c0_6] : memref<64x64xbf16, #tpu.memory_space<vmem>>, vector<64x64xbf16>
    %cst_7 = arith.constant dense<0.000000e+00> : vector<64x256xf32>
    %13 = tpu.matmul %12, %11, %cst_7 {dimension_numbers = #tpu.dot_dimension_numbers<[1], [0], [0], [1], [0, 0, 1, 1], [], []>} : vector<64x64xbf16>, vector<64x256xbf16>, vector<64x256xf32> -> vector<64x256xf32>
    %14 = arith.truncf %13 : vector<64x256xf32> to vector<64x256xbf16>
    %c0_8 = arith.constant 0 : index
    %c0_9 = arith.constant 0 : index
    %15 = vector.load %arg5[%c0_8, %c0_9] : memref<64x1xbf16, #tpu.memory_space<vmem>>, vector<64x1xbf16>
    %16 = vector.broadcast %15 : vector<64x1xbf16> to vector<64x256xbf16>
    %17 = arith.addf %14, %16 : vector<64x256xbf16>
    %cst_10 = arith.constant 1.000980e-02 : bf16
    %18 = vector.broadcast %cst_10 : bf16 to vector<64x256xbf16>
    %19 = arith.mulf %18, %17 : vector<64x256xbf16>
    %20 = arith.maximumf %17, %19 : vector<64x256xbf16>
    %c0_11 = arith.constant 0 : index
    %c0_12 = arith.constant 0 : index
    %21 = vector.load %arg6[%c0_11, %c0_12] : memref<64x64xbf16, #tpu.memory_space<vmem>>, vector<64x64xbf16>
    %cst_13 = arith.constant dense<0.000000e+00> : vector<64x256xf32>
    %22 = tpu.matmul %21, %20, %cst_13 {dimension_numbers = #tpu.dot_dimension_numbers<[1], [0], [0], [1], [0, 0, 1, 1], [], []>} : vector<64x64xbf16>, vector<64x256xbf16>, vector<64x256xf32> -> vector<64x256xf32>
    %23 = arith.truncf %22 : vector<64x256xf32> to vector<64x256xbf16>
    %c0_14 = arith.constant 0 : index
    %c0_15 = arith.constant 0 : index
    %24 = vector.load %arg7[%c0_14, %c0_15] : memref<64x1xbf16, #tpu.memory_space<vmem>>, vector<64x1xbf16>
    %25 = vector.broadcast %24 : vector<64x1xbf16> to vector<64x256xbf16>
    %26 = arith.addf %23, %25 : vector<64x256xbf16>
    %cst_16 = arith.constant 1.000980e-02 : bf16
    %27 = vector.broadcast %cst_16 : bf16 to vector<64x256xbf16>
    %28 = arith.mulf %27, %26 : vector<64x256xbf16>
    %29 = arith.maximumf %26, %28 : vector<64x256xbf16>
    %c0_17 = arith.constant 0 : index
    %c0_18 = arith.constant 0 : index
    %30 = vector.load %arg8[%c0_17, %c0_18] : memref<1x64xbf16, #tpu.memory_space<vmem>>, vector<1x64xbf16>
    %cst_19 = arith.constant dense<0.000000e+00> : vector<1x256xf32>
    %31 = tpu.matmul %30, %29, %cst_19 {dimension_numbers = #tpu.dot_dimension_numbers<[1], [0], [0], [1], [0, 0, 1, 1], [], []>} : vector<1x64xbf16>, vector<64x256xbf16>, vector<1x256xf32> -> vector<1x256xf32>
    %c0_20 = arith.constant 0 : index
    %32 = memref.load %arg9[%c0_20] : memref<1xf32, #tpu.memory_space<smem>>
    %33 = vector.broadcast %32 : f32 to vector<1x256xf32>
    %34 = arith.addf %31, %33 : vector<1x256xf32>
    %35 = arith.addf %0, %34 : vector<1x256xf32>
    %c0_21 = arith.constant 0 : index
    %c0_22 = arith.constant 0 : index
    %36 = vector.load %arg10[%c0_21, %c0_22] : memref<1x256xf32, #tpu.memory_space<vmem>>, vector<1x256xf32>
    tpu.vector_store %arg10[%c0_21, %c0_22], %35 {strides = array<i32>} : memref<1x256xf32, #tpu.memory_space<vmem>>, vector<1x256xf32>,
    return
  }
  func.func @transform_0(%arg0: i32) -> (i32, i32) {
    %c0_i32 = arith.constant 0 : i32
    %c0_i32_0 = arith.constant 0 : i32
    return %c0_i32, %arg0 : i32, i32
  }
  func.func @transform_1(%arg0: i32) -> (i32, i32) {
    %c0_i32 = arith.constant 0 : i32
    %c0_i32_0 = arith.constant 0 : i32
    %c0_i32_1 = arith.constant 0 : i32
    return %c0_i32, %c0_i32_0 : i32, i32
  }
  func.func @transform_2(%arg0: i32) -> (i32, i32) {
    %c0_i32 = arith.constant 0 : i32
    %c0_i32_0 = arith.constant 0 : i32
    %c0_i32_1 = arith.constant 0 : i32
    return %c0_i32, %c0_i32_0 : i32, i32
  }
  func.func @transform_3(%arg0: i32) -> (i32, i32) {
    %c0_i32 = arith.constant 0 : i32
    %c0_i32_0 = arith.constant 0 : i32
    %c0_i32_1 = arith.constant 0 : i32
    return %c0_i32, %c0_i32_0 : i32, i32
  }
  func.func @transform_4(%arg0: i32) -> (i32, i32) {
    %c0_i32 = arith.constant 0 : i32
    %c0_i32_0 = arith.constant 0 : i32
    %c0_i32_1 = arith.constant 0 : i32
    return %c0_i32, %c0_i32_0 : i32, i32
  }
  func.func @transform_5(%arg0: i32) -> (i32, i32) {
    %c0_i32 = arith.constant 0 : i32
    %c0_i32_0 = arith.constant 0 : i32
    %c0_i32_1 = arith.constant 0 : i32
    return %c0_i32, %c0_i32_0 : i32, i32
  }
  func.func @transform_6(%arg0: i32) -> (i32, i32) {
    %c0_i32 = arith.constant 0 : i32
    %c0_i32_0 = arith.constant 0 : i32
    %c0_i32_1 = arith.constant 0 : i32
    return %c0_i32, %c0_i32_0 : i32, i32
  }
  func.func @transform_7(%arg0: i32) -> (i32, i32) {
    %c0_i32 = arith.constant 0 : i32
    %c0_i32_0 = arith.constant 0 : i32
    %c0_i32_1 = arith.constant 0 : i32
    return %c0_i32, %c0_i32_0 : i32, i32
  }
  func.func @transform_8(%arg0: i32) -> i32 {
    %c0_i32 = arith.constant 0 : i32
    %c0_i32_0 = arith.constant 0 : i32
    return %c0_i32 : i32
  }
  func.func @transform_9(%arg0: i32) -> (i32, i32) {
    %c0_i32 = arith.constant 0 : i32
    %c0_i32_0 = arith.constant 0 : i32
    return %c0_i32, %arg0 : i32, i32
  }
}

</mosaic_0001>

<bundles_post_ra>
// kernel: tpu_custom_call.1
= control target key start
LH: loop header
LB: loop body
LE: loop exit
PB: predicated region body
PF: predicated region fallthrough
CT: control target
= control target key end

     0   :  { %s1845_s0 = inlined_call_operand.vmem [shape: f32[1,512], index: 0, kind: input, shape index: {}]   ;;  %s1846_s1 = inlined_call_operand.vmem [shape: bf16[64,1], index: 1, kind: input, shape index: {}]   ;;  %s1847_s2 = inlined_call_operand.vmem [shape: bf16[64,1], index: 2, kind: input, shape index: {}]   ;;  %s1848_s3 = inlined_call_operand.vmem [shape: bf16[64,64], index: 3, kind: input, shape index: {}]   ;;  %s1849_s4 = inlined_call_operand.vmem [shape: bf16[64,1], index: 4, kind: input, shape index: {}]   ;;  %s1850_s5 = inlined_call_operand.vmem [shape: bf16[64,64], index: 5, kind: input, shape index: {}]   ;;  %s1851_s6 = inlined_call_operand.vmem [shape: bf16[64,1], index: 6, kind: input, shape index: {}]   ;;  %s1852_s7 = inlined_call_operand.vmem [shape: bf16[1,64], index: 7, kind: input, shape index: {}]   ;;  %s1853_s8 = inlined_call_operand.<no memory space> [shape: f32[1], index: 8, kind: input, shape index: {}]   ;;  %s1854_s9 = inlined_call_operand.hbm [shape: f32[1,512], index: 9, kind: output, shape index: {}]  }
   0x1   :  { %14 = sst [smem:[#allocation2]] %s1853_s8 }
   0x2   :  { %15 = vsyncpa [#allocation4], 0 }
   0x3   :  { %17 = vsyncpa [#allocation4 + $0x1], 0  ;;  %s1556_s11 = smov 0   ;;  %s1558_s12 = smov 0  }
   0x4   :  { %s1560_s13 = smov 0   ;;  %s1562_s14 = smov 0  }
   0x5 LB: > { %s1577_s8 = sadd.s32 4294967295, %s1497_s14   ;;  %s1337_s15 = sadd.s32 4294967294, %s1497_s14   ;;  %s1497_s14 = sphi %s1562_s14, %s1860_s14   ;;  %s1493_s13 = sphi %s1560_s13, %s1859_s13   ;;  %s1489_s12 = sphi %s1558_s12, %s1858_s12   ;;  %s1485_s11 = sphi %s1556_s11, %s1857_s11  }
   0x6   : > { %s1581_s16 = sadd.s32 1, %s1497_s14   ;;  %s224_s17 = sadd.s32 1, %s1493_s13 }
   0x7   : > { %s221_s18 = ssub.s32 %s1497_s14, %s1581_s16  ;;  %p234_p0 = scmp.ne.s32.totalorder %s1493_s13, %s1489_s12 }
   0x8   : > { %p222_p1 = scmp.eq.s32.totalorder %s221_s18, 0  ;;  %p235_p2 = scmp.eq.s32.totalorder %s1577_s8, 1 }
   0x9   : > { %p240_p3 = scmp.ne.s32.totalorder %s1489_s12, %s1485_s11  ;;  %p241_p4 = scmp.eq.s32.totalorder %s1337_s15, 1 }
   0xa   : > { %s1592_s19 = scalar_select %p222_p1, %s1493_s13, %s224_s17  }
   0xb   : > { %p1594_p5 = por %p235_p2, %p234_p0  ;;  %p1598_p6 = por %p241_p4, %p240_p3 }
   0xc   : > { %p1340_p7 = scmp.ge.s32.totalorder %s1497_s14, 1  ;;  %p291_p8 = scmp.lt.s32.totalorder %s1497_s14, 3 }
   0xe   : > { %p292_p9 = pnand %p1340_p7, %p291_p8 }
   0xf   : > { %v480_v0 = vld [vmem:[%s1847_s2] sm:$0xf] (!%p292_p9)  ;;  %v1499_v2 = vmov (!%p292_p9), 0   ;;  %v481_v3 = vld [vmem:[%s1847_s2 + $0x4] sm:$0xf] (!%p292_p9)  ;;  %s1342_s18 = sshll.u32 (!%p292_p9), %s1577_s8, 1  ;;  %v336_v33 = vlaneseq (!%p292_p9) }
  0x10   : > { %295 = sbr.rel (%p292_p9) target bundleno = 926 (0x39e), region = 56  ;;  %v348_v1 = vld [vmem:[%s1846_s1] sm:$0xf] (!%p292_p9)  ;;  %1426 = vset.pattern.permute.xlu1 (!%p292_p9), %v1499_v2  ;;  %1425 = vset.pattern.permute.xlu0 (!%p292_p9), %v1499_v2  ;;  %v349_v4 = vld [vmem:[%s1846_s1 + $0x4] sm:$0xf] (!%p292_p9)  ;;  %p327_p10 = scmp.lt.s32.totalorder (!%p292_p9), %s1342_s18, 3 }
  0x11   : > { %490 = vperm.xlu1 (!%p292_p9), %1426, %v480_v0   ;;  %358 = vperm.xlu0 (!%p292_p9), %1425, %v348_v1   ;;  %v351_v5 = vld [vmem:[%s1846_s1 + $0xc] sm:$0xf] (!%p292_p9)  ;;  %v350_v6 = vld [vmem:[%s1846_s1 + $0x8] sm:$0xf] (!%p292_p9)  ;;  %v353_v9 = vld [vmem:[%s1846_s1 + $0x14] sm:$0xf] (!%p292_p9) }
  0x12   : > { %721 = vmatprep.mubr.bf16.mxu0 (!%p292_p9), %v1499_v2  ;;  %994 = vmatprep.mubr.bf16.mxu1 (!%p292_p9), %v1499_v2  ;;  %v483_v7 = vld [vmem:[%s1847_s2 + $0xc] sm:$0xf] (!%p292_p9)  ;;  %v482_v8 = vld [vmem:[%s1847_s2 + $0x8] sm:$0xf] (!%p292_p9)  ;;  %v352_v10 = vld [vmem:[%s1846_s1 + $0x10] sm:$0xf] (!%p292_p9) }
  0x13   : > { %v485_v11 = vld [vmem:[%s1847_s2 + $0x14] sm:$0xf] (!%p292_p9)  ;;  %v484_v12 = vld [vmem:[%s1847_s2 + $0x10] sm:$0xf] (!%p292_p9)  ;;  %v355_v13 = vld [vmem:[%s1846_s1 + $0x1c] sm:$0xf] (!%p292_p9) }
  0x14   : > { %v354_v14 = vld [vmem:[%s1846_s1 + $0x18] sm:$0xf] (!%p292_p9)  ;;  %v487_v15 = vld [vmem:[%s1847_s2 + $0x1c] sm:$0xf] (!%p292_p9)  ;;  %v771_v17 = vld [vmem:[%s1849_s4 + $0x4] sm:$0xf] (!%p292_p9) }
  0x15   : > { %502 = vperm.xlu1 (!%p292_p9), %1426, %v481_v3   ;;  %370 = vperm.xlu0 (!%p292_p9), %1425, %v349_v4   ;;  %v486_v16 = vld [vmem:[%s1847_s2 + $0x18] sm:$0xf] (!%p292_p9)  ;;  %v770_v18 = vld [vmem:[%s1849_s4] sm:$0xf] (!%p292_p9)  ;;  %v773_v19 = vld [vmem:[%s1849_s4 + $0xc] sm:$0xf] (!%p292_p9) }
  0x16   : > { %v772_v20 = vld [vmem:[%s1849_s4 + $0x8] sm:$0xf] (!%p292_p9)  ;;  %v775_v21 = vld [vmem:[%s1849_s4 + $0x14] sm:$0xf] (!%p292_p9)  ;;  %v774_v22 = vld [vmem:[%s1849_s4 + $0x10] sm:$0xf] (!%p292_p9) }
  0x17   : > { %v777_v23 = vld [vmem:[%s1849_s4 + $0x1c] sm:$0xf]  ;;  %v776_v24 = vld [vmem:[%s1849_s4 + $0x18] sm:$0xf]  ;;  %v1044_v25 = vld [vmem:[%s1851_s6 + $0x4] sm:$0xf] }
  0x18   : > { %v1043_v26 = vld [vmem:[%s1851_s6] sm:$0xf]  ;;  %v1046_v27 = vld [vmem:[%s1851_s6 + $0xc] sm:$0xf]  ;;  %v1045_v28 = vld [vmem:[%s1851_s6 + $0x8] sm:$0xf] }
  0x19   : > { %394 = vperm.xlu1 %1426, %v351_v5   ;;  %382 = vperm.xlu0 %1425, %v350_v6   ;;  %v1048_v29 = vld [vmem:[%s1851_s6 + $0x14] sm:$0xf]  ;;  %v1047_v30 = vld [vmem:[%s1851_s6 + $0x10] sm:$0xf]  ;;  %v1050_v31 = vld [vmem:[%s1851_s6 + $0x1c] sm:$0xf] }
  0x1a   : > { %v1049_v32 = vld [vmem:[%s1851_s6 + $0x18] sm:$0xf]  ;;  %s1862_s18 = smov (!%p327_p10, %s1342_s18), 3  ;;  %v1706_v34 = vshrl.u32 %v336_v33, 7  ;;  %v1500_v42 = vmov 839922192  }
  0x1b   : > { %s329_s24 = scalar_lea.vmem %s1845_s0, %s1862_s18  ;;  %v362_v43 = vunpack.c.l.s4 %v1500_v42  ;;  %vm676_vm0 = vcmask 523264   ;;  %s1196_s30 = sld [smem:[#allocation2]]  ;;  %vm1263_vm1 = vcmp.lt.s32.totalorder %v336_v33, 256 }
  0x1c   : > { %v338_v35 = vsub.s32 0, %v1706_v34  ;;  %v342_v36 = vsub.s32 1, %v1706_v34  ;;  %v1713_v37 = vld [vmem:[%s329_s24] sm:$0x3]  ;;  %s323_s10 = sand.u32 1, %s1489_s12   ;;  %s1382_s17 = sshll.u32 %s1577_s8, 5 }
  0x1d   : > { %526 = vperm.xlu1 %1426, %v483_v7   ;;  %514 = vperm.xlu0 %1425, %v482_v8   ;;  %v363_v46 = vunpack.c.0.s8 %v362_v43  ;;  %s1341_s15 = sshll.u32 %s323_s10, 1  ;;  %s1803_s25 = scalar_lea.hbm %s1854_s9, %s1382_s17 }
  0x1e   : > { %v339_v38 = vrot.slane %v1713_v37, %v338_v35  ;;  %v343_v39 = vrot.slane %v1713_v37, %v342_v36  ;;  %s325_s18 = scalar_lea.vmem [#allocation3], %s1341_s15  ;;  %s1267_s26 = scalar_lea.sflag [#allocation4], %s323_s10 }
  0x1f   : > { %v1718_v49 = vsub.s32 %v363_v46, %v1706_v34  ;;  %s1281_s22 = sshll.u32 %s325_s18, 4  ;;  %s1502_s27 = smov [#allocation3]   ;;  %s1805_s22 = int_to_ptr.vmem [resolvable:$true] %s1281_s22 }
  0x20   : > { %v346_v40 = vpack.c.bf16 %v339_v38, %v339_v38  ;;  %v347_v41 = vpack.c.bf16 %v343_v39, %v343_v39  ;;  %s1435_s8 = scalar_lea.vmem %s1805_s22, 32  ;;  %s1439_s28 = sshll.u32 %s1502_s27, 4  ;;  %s1440_s28 = int_to_ptr.vmem [resolvable:$false] %s1439_s28 }
  0x21   : > { %418 = vperm.xlu1 %1426, %v353_v9   ;;  %406 = vperm.xlu0 %1425, %v352_v10   ;;  %p1436_p11 = scmp.ne.s32.totalorder %s1805_s22, %s1435_s8  ;;  %s1441_s29 = scalar_lea.vmem %s1440_s28, 64 }
  0x22   : > { %v453_v44 = vpack.i.b16 %v346_v40, %v346_v40  ;;  %v460_v45 = vpack.i.b16 %v347_v41, %v347_v41  ;;  %p1442_p0 = scmp.lt.s32.totalorder %s1805_s22, %s1440_s28  ;;  %p1443_p1 = scmp.lt.s32.totalorder %s1441_s29, %s1435_s8 }
  0x23   : > { %p1437_p12 = pnand %p1436_p11, %p1594_p5 }
  0x24   : > { %v458_v47 = vrot.slane %v453_v44, %v338_v35  ;;  %v465_v48 = vrot.slane %v460_v45, %v338_v35  ;;  %p1444_p2 = por %p1443_p1, %p1442_p0 }
  0x25   : > { %550 = vperm.xlu1 %1426, %v485_v11   ;;  %538 = vperm.xlu0 %1425, %v484_v12   ;;  %p1438_p13 = pneg %p1437_p12 }
  0x26   : > { %v1343_v50 = vcombine.low %v458_v47, %v465_v48 }
  0x27   : > { %p1445_p3 = pnand %p1444_p2, %p1438_p13 }
  0x29   : > { %442 = vperm.xlu1 %1426, %v355_v13   ;;  %430 = vperm.xlu0 %1425, %v354_v14  }
  0x2d   : > { %574 = vperm.xlu1 %1426, %v487_v15   ;;  %562 = vperm.xlu0 %1425, %v486_v16  }
  0x31   : > { %792 = vperm.xlu1 %1426, %v771_v17   ;;  %780 = vperm.xlu0 %1425, %v770_v18  }
  0x35   : > { %816 = vperm.xlu1 %1426, %v773_v19   ;;  %804 = vperm.xlu0 %1425, %v772_v20  }
  0x39   : > { %840 = vperm.xlu1 %1426, %v775_v21   ;;  %828 = vperm.xlu0 %1425, %v774_v22  }
  0x3d   : > { %864 = vperm.xlu1 %1426, %v777_v23   ;;  %852 = vperm.xlu0 %1425, %v776_v24  }
  0x41   : > { %1065 = vperm.xlu1 %1426, %v1044_v25   ;;  %1053 = vperm.xlu0 %1425, %v1043_v26  }
  0x45   : > { %1089 = vperm.xlu1 %1426, %v1046_v27   ;;  %1077 = vperm.xlu0 %1425, %v1045_v28  }
  0x49   : > { %1113 = vperm.xlu1 %1426, %v1048_v29   ;;  %1101 = vperm.xlu0 %1425, %v1047_v30  }
  0x4d   : > { %1137 = vperm.xlu1 %1426, %v1050_v31   ;;  %1125 = vperm.xlu0 %1425, %v1049_v32  }
  0x90   : > { %v491_v51 = vpop.permute.xlu1 %490  ;;  %v359_v52 = vpop.permute.xlu0 %358 }
  0x91   : > { %v367_v53 = vrot.slane %v359_v52, %v1718_v49  ;;  %v499_v54 = vrot.slane %v491_v51, %v1718_v49 }
  0x93   : > { %v472_v55 = vmul.bf16 %v1343_v50, %v367_v53 }
  0x94   : > { %v503_v56 = vpop.permute.xlu1 %502  ;;  %v371_v57 = vpop.permute.xlu0 %370 }
  0x95   : > { %v379_v58 = vrot.slane %v371_v57, %v1718_v49  ;;  %v584_v59 = vadd.bf16 %v499_v54, %v472_v55  ;;  %v511_v60 = vrot.slane %v503_v56, %v1718_v49 }
  0x97   : > { %v473_v61 = vmul.bf16 %v1343_v50, %v379_v58  ;;  %v592_v0 = vmul.bf16 1009007652, %v584_v59 }
  0x98   : > { %v395_v62 = vpop.permute.xlu1 %394  ;;  %v383_v63 = vpop.permute.xlu0 %382 }
  0x99   : > { %v403_v1 = vrot.slane %v395_v62, %v1718_v49  ;;  %v391_v3 = vrot.slane %v383_v63, %v1718_v49  ;;  %v585_v4 = vadd.bf16 %v511_v60, %v473_v61  ;;  %v600_v9 = vmax.bf16 %v592_v0, %v584_v59 }
  0x9b   : > { %v593_v5 = vmul.bf16 1009007652, %v585_v4  ;;  %v475_v6 = vmul.bf16 %v1343_v50, %v403_v1  ;;  %v474_v10 = vmul.bf16 %v1343_v50, %v391_v3  ;;  %v1428_v1 = vld [vmem:[%s1848_s3 + $0x8] sm:$0xff]   ;;  %v1429_v3 = vld [vmem:[%s1848_s3 + $0x10] sm:$0xff]  }
  0x9c   : > { %v527_v7 = vpop.permute.xlu1 %526  ;;  %v515_v8 = vpop.permute.xlu0 %514 }
  0x9d   : > { %v535_v11 = vrot.slane %v527_v7, %v1718_v49  ;;  %v523_v12 = vrot.slane %v515_v8, %v1718_v49  ;;  %v601_v13 = vmax.bf16 %v593_v5, %v585_v4  ;;  %v1430_v4 = vld [vmem:[%s1848_s3 + $0x18] sm:$0xff]  }
  0x9f   : > { %v587_v14 = vadd.bf16 %v535_v11, %v475_v6  ;;  %v586_v15 = vadd.bf16 %v523_v12, %v474_v10  ;;  %v1349_v16 = vcombine.high %v600_v9, %v601_v13  ;;  %v1348_v17 = vcombine.low %v600_v9, %v601_v13 }
  0xa0   : > { %v419_v18 = vpop.permute.xlu1 %418  ;;  %v407_v19 = vpop.permute.xlu0 %406 }
  0xa1   : > { %v595_v20 = vmul.bf16 1009007652, %v587_v14  ;;  %v594_v21 = vmul.bf16 1009007652, %v586_v15  ;;  %v427_v22 = vrot.slane %v419_v18, %v1718_v49  ;;  %v415_v23 = vrot.slane %v407_v19, %v1718_v49  ;;  %689 = vmatprep.subr.bf16.mxu0 %v1349_v16 }
  0xa2   : > { %690 = vmatpush1.bf16.msra.mxu0 %v1348_v17 }
  0xa3   : > { %v603_v24 = vmax.bf16 %v595_v20, %v587_v14  ;;  %v602_v25 = vmax.bf16 %v594_v21, %v586_v15  ;;  %v477_v26 = vmul.bf16 %v1343_v50, %v427_v22  ;;  %v476_v27 = vmul.bf16 %v1343_v50, %v415_v23 }
  0xa4   : > { %v551_v28 = vpop.permute.xlu1 %550  ;;  %v539_v29 = vpop.permute.xlu0 %538 }
  0xa5   : > { %v559_v30 = vrot.slane %v551_v28, %v1718_v49  ;;  %v547_v31 = vrot.slane %v539_v29, %v1718_v49  ;;  %v1351_v32 = vcombine.high %v602_v25, %v603_v24  ;;  %v1350_v35 = vcombine.low %v602_v25, %v603_v24 }
  0xa7   : > { %v589_v36 = vadd.bf16 %v559_v30, %v477_v26  ;;  %v588_v38 = vadd.bf16 %v547_v31, %v476_v27  ;;  %691 = vmatprep.subr.bf16.mxu0 %v1351_v32 }
  0xa8   : > { %v443_v39 = vpop.permute.xlu1 %442  ;;  %v431_v40 = vpop.permute.xlu0 %430  ;;  %692 = vmatpush1.bf16.msra.mxu0 %v1350_v35 }
  0xa9   : > { %v597_v41 = vmul.bf16 1009007652, %v589_v36  ;;  %v596_v42 = vmul.bf16 1009007652, %v588_v38  ;;  %v451_v43 = vrot.slane %v443_v39, %v1718_v49  ;;  %v439_v44 = vrot.slane %v431_v40, %v1718_v49 }
  0xab   : > { %v605_v45 = vmax.bf16 %v597_v41, %v589_v36  ;;  %v604_v46 = vmax.bf16 %v596_v42, %v588_v38  ;;  %v479_v47 = vmul.bf16 %v1343_v50, %v451_v43  ;;  %v478_v48 = vmul.bf16 %v1343_v50, %v439_v44  ;;  %v1427_v50 = vld [vmem:[%s1848_s3] sm:$0xff]  }
  0xac   : > { %v575_v51 = vpop.permute.xlu1 %574  ;;  %v563_v52 = vpop.permute.xlu0 %562 }
  0xad   : > { %v583_v53 = vrot.slane %v575_v51, %v1718_v49  ;;  %v571_v54 = vrot.slane %v563_v52, %v1718_v49  ;;  %v1353_v55 = vcombine.high %v604_v46, %v605_v45  ;;  %v1352_v56 = vcombine.low %v604_v46, %v605_v45 }
  0xaf   : > { %v591_v57 = vadd.bf16 %v583_v53, %v479_v47  ;;  %v590_v58 = vadd.bf16 %v571_v54, %v478_v48  ;;  %693 = vmatprep.subr.bf16.mxu0 %v1353_v55 }
  0xb0   : > { %694 = vmatpush1.bf16.msra.mxu0 %v1352_v56  ;;  %v793_v5 = vpop.permute.xlu1 %792  ;;  %v781_v6 = vpop.permute.xlu0 %780 }
  0xb1   : > { %v599_v59 = vmul.bf16 1009007652, %v591_v57  ;;  %v598_v60 = vmul.bf16 1009007652, %v590_v58  ;;  %v801_v7 = vrot.slane %v793_v5, %v1718_v49  ;;  %v789_v8 = vrot.slane %v781_v6, %v1718_v49 }
  0xb3   : > { %v607_v61 = vmax.bf16 %v599_v59, %v591_v57  ;;  %v606_v62 = vmax.bf16 %v598_v60, %v590_v58  ;;  %v1360_v12 = vcombine.low %v789_v8, %v801_v7 }
  0xb4   : > { %v817_v15 = vpop.permute.xlu1 %816  ;;  %v805_v16 = vpop.permute.xlu0 %804 }
  0xb5   : > { %v1355_v63 = vcombine.high %v606_v62, %v607_v61  ;;  %v1354_v0 = vcombine.low %v606_v62, %v607_v61  ;;  %v825_v20 = vrot.slane %v817_v15, %v1718_v49  ;;  %v813_v21 = vrot.slane %v805_v16, %v1718_v49  ;;  %v1432_v15 = vld [vmem:[%s1850_s5 + $0x8] sm:$0xff]   ;;  %v1433_v16 = vld [vmem:[%s1850_s5 + $0x10] sm:$0xff]  }
  0xb7   : > { %695 = vmatprep.subr.bf16.mxu0 %v1355_v63  ;;  %v1361_v28 = vcombine.low %v813_v21, %v825_v20 }
  0xb8   : > { %696 = vmatpush1.bf16.msra.mxu0 %v1354_v0  ;;  %v841_v32 = vpop.permute.xlu1 %840  ;;  %v829_v35 = vpop.permute.xlu0 %828 }
  0xb9   : > { %v849_v40 = vrot.slane %v841_v32, %v1718_v49  ;;  %v837_v41 = vrot.slane %v829_v35, %v1718_v49 }
  0xbb   : > { %1356 = vmatmul.mubr.msk.bf16.vlgmr.msra.gmra.mrb[0].mxu0 %vm676_vm0, %v1427_v50  ;;  %v1362_v48 = vcombine.low %v837_v41, %v849_v40 }
  0xbc   : > { %731 = vmatprep.mubr.bf16.mxu0 %v1499_v2  ;;  %v865_v54 = vpop.permute.xlu1 %864  ;;  %v853_v55 = vpop.permute.xlu0 %852 }
  0xbd   : > { %v873_v59 = vrot.slane %v865_v54, %v1718_v49  ;;  %v861_v60 = vrot.slane %v853_v55, %v1718_v49 }
  0xc3   : > { %1357 = vmatmul.mubr.msk.bf16.gmra.mrb[4].mxu0 %vm676_vm0, %v1428_v1 }
  0xc4   : > { %741 = vmatprep.mubr.bf16.mxu0 %v1499_v2 }
  0xcb   : > { %1358 = vmatmul.mubr.msk.bf16.gmra.mrb[8].mxu0 %vm676_vm0, %v1429_v3  ;;  %v1363_v3 = vcombine.low %v861_v60, %v873_v59 }
  0xcc   : > { %751 = vmatprep.mubr.bf16.mxu0 %v1499_v2 }
  0xd3   : > { %1359 = vmatmul.mubr.msk.bf16.gmra.mrb[12].mxu0 %vm676_vm0, %v1430_v4 }
  0xd4   : > { %1233 = vmatprep.mubr.bf16.mxu0 %v1499_v2 }
 0x18e   : > { %v723_v9 = vpop.f32.mrb[0].mxu0 }
 0x18f   : > { %v725_v10 = vpop.f32.mrb[1].mxu0 }
 0x190   : > { %v727_v11 = vpop.f32.mrb[2].mxu0 }
 0x191   : > { %v762_v13 = vpack.c.bf16 %v727_v11, %v723_v9  ;;  %v729_v14 = vpop.f32.mrb[3].mxu0 }
 0x192   : > { %v763_v17 = vpack.c.bf16 %v729_v14, %v725_v10  ;;  %v1431_v14 = vld [vmem:[%s1850_s5] sm:$0xff]  }
 0x193   : > { %v898_v18 = vadd.bf16 %v1360_v12, %v762_v13 }
 0x194   : > { %v899_v19 = vadd.bf16 %v1360_v12, %v763_v17  ;;  %v1434_v17 = vld [vmem:[%s1850_s5 + $0x18] sm:$0xff]  }
 0x195   : > { %v906_v22 = vmul.bf16 1009007652, %v898_v18 }
 0x196   : > { %v733_v23 = vpop.f32.mrb[4].mxu0  ;;  %v907_v24 = vmul.bf16 1009007652, %v899_v19 }
 0x197   : > { %v735_v25 = vpop.f32.mrb[5].mxu0  ;;  %v914_v31 = vmax.bf16 %v906_v22, %v898_v18  ;;  %v1066_v18 = vpop.permute.xlu1 %1065 }
 0x198   : > { %v737_v26 = vpop.f32.mrb[6].mxu0  ;;  %v915_v27 = vmax.bf16 %v907_v24, %v899_v19  ;;  %v1054_v19 = vpop.permute.xlu0 %1053  ;;  %v1074_v20 = vrot.slane %v1066_v18, %v1718_v49 }
 0x199   : > { %v764_v29 = vpack.c.bf16 %v737_v26, %v733_v23  ;;  %v739_v30 = vpop.f32.mrb[7].mxu0  ;;  %v1062_v21 = vrot.slane %v1054_v19, %v1718_v49 }
 0x19a   : > { %v765_v36 = vpack.c.bf16 %v739_v30, %v735_v25  ;;  %962 = vmatprep.subr.bf16.mxu1 %v915_v27 }
 0x19b   : > { %v900_v38 = vadd.bf16 %v1361_v28, %v764_v29  ;;  %963 = vmatpush1.bf16.msra.mxu1 %v914_v31  ;;  %v1372_v25 = vcombine.low %v1062_v21, %v1074_v20 }
 0x19c   : > { %v901_v39 = vadd.bf16 %v1361_v28, %v765_v36  ;;  %v1090_v28 = vpop.permute.xlu1 %1089 }
 0x19d   : > { %v908_v42 = vmul.bf16 1009007652, %v900_v38  ;;  %v1098_v32 = vrot.slane %v1090_v28, %v1718_v49  ;;  %v1197_v28 = vstv %s1196_s30 }
 0x19e   : > { %v909_v43 = vmul.bf16 1009007652, %v901_v39  ;;  %v743_v44 = vpop.f32.mrb[8].mxu0 }
 0x19f   : > { %v745_v45 = vpop.f32.mrb[9].mxu0  ;;  %v916_v53 = vmax.bf16 %v908_v42, %v900_v38 }
 0x1a0   : > { %v747_v46 = vpop.f32.mrb[10].mxu0  ;;  %v917_v47 = vmax.bf16 %v909_v43, %v901_v39 }
 0x1a1   : > { %v766_v51 = vpack.c.bf16 %v747_v46, %v743_v44  ;;  %v749_v52 = vpop.f32.mrb[11].mxu0 }
 0x1a2   : > { %v767_v56 = vpack.c.bf16 %v749_v52, %v745_v45  ;;  %964 = vmatprep.subr.bf16.mxu1 %v917_v47  ;;  %v1114_v47 = vpop.permute.xlu1 %1113 }
 0x1a3   : > { %v902_v57 = vadd.bf16 %v1362_v48, %v766_v51  ;;  %965 = vmatpush1.bf16.msra.mxu1 %v916_v53  ;;  %v1122_v54 = vrot.slane %v1114_v47, %v1718_v49 }
 0x1a4   : > { %v903_v58 = vadd.bf16 %v1362_v48, %v767_v56 }
 0x1a5   : > { %v910_v61 = vmul.bf16 1009007652, %v902_v57 }
 0x1a6   : > { %v911_v62 = vmul.bf16 1009007652, %v903_v58  ;;  %v753_v63 = vpop.f32.mrb[12].mxu0 }
 0x1a7   : > { %v755_v0 = vpop.f32.mrb[13].mxu0  ;;  %v918_v6 = vmax.bf16 %v910_v61, %v902_v57 }
 0x1a8   : > { %v757_v50 = vpop.f32.mrb[14].mxu0  ;;  %v919_v1 = vmax.bf16 %v911_v62, %v903_v58 }
 0x1a9   : > { %v768_v4 = vpack.c.bf16 %v757_v50, %v753_v63  ;;  %v759_v5 = vpop.f32.mrb[15].mxu0 }
 0x1aa   : > { %v769_v7 = vpack.c.bf16 %v759_v5, %v755_v0  ;;  %966 = vmatprep.subr.bf16.mxu1 %v919_v1  ;;  %v1138_v1 = vpop.permute.xlu1 %1137 }
 0x1ab   : > { %v904_v8 = vadd.bf16 %v1363_v3, %v768_v4  ;;  %967 = vmatpush1.bf16.msra.mxu1 %v918_v6 }
 0x1ac   : > { %v905_v9 = vadd.bf16 %v1363_v3, %v769_v7  ;;  %v1146_v7 = vrot.slane %v1138_v1, %v1718_v49 }
 0x1ad   : > { %v912_v10 = vmul.bf16 1009007652, %v904_v8 }
 0x1ae   : > { %v913_v11 = vmul.bf16 1009007652, %v905_v9 }
 0x1af   : > { %v920_v13 = vmax.bf16 %v912_v10, %v904_v8 }
 0x1b0   : > { %v921_v12 = vmax.bf16 %v913_v11, %v905_v9 }
 0x1b2   : > { %968 = vmatprep.subr.bf16.mxu1 %v921_v12 }
 0x1b3   : > { %969 = vmatpush1.bf16.msra.mxu1 %v920_v13 }
 0x1b6   : > { %1368 = vmatmul.mubr.msk.bf16.vlgmr.msra.gmra.mrb[0].mxu1 %vm676_vm0, %v1431_v14 }
 0x1b7   : > { %1004 = vmatprep.mubr.bf16.mxu1 %v1499_v2 }
 0x1be   : > { %1369 = vmatmul.mubr.msk.bf16.gmra.mrb[4].mxu1 %vm676_vm0, %v1432_v15 }
 0x1bf   : > { %1014 = vmatprep.mubr.bf16.mxu1 %v1499_v2 }
 0x1c6   : > { %1370 = vmatmul.mubr.msk.bf16.gmra.mrb[8].mxu1 %vm676_vm0, %v1433_v16 }
 0x1c7   : > { %1024 = vmatprep.mubr.bf16.mxu1 %v1499_v2  ;;  %v1078_v2 = vpop.permute.xlu0 %1077 }
 0x1c8   : > { %v1086_v35 = vrot.slane %v1078_v2, %v1718_v49 }
 0x1ca   : > { %v1373_v43 = vcombine.low %v1086_v35, %v1098_v32 }
 0x1cb   : > { %v1102_v48 = vpop.permute.xlu0 %1101 }
 0x1cc   : > { %v1110_v55 = vrot.slane %v1102_v48, %v1718_v49 }
 0x1ce   : > { %1371 = vmatmul.mubr.msk.bf16.gmra.mrb[12].mxu1 %vm676_vm0, %v1434_v17  ;;  %v1374_v62 = vcombine.low %v1110_v55, %v1122_v54 }
 0x1cf   : > { %v1126_v3 = vpop.permute.xlu0 %1125 }
 0x1d0   : > { %v1134_v8 = vrot.slane %v1126_v3, %v1718_v49 }
 0x1d2   : > { %v1375_v15 = vcombine.low %v1134_v8, %v1146_v7 }
 0x289   : > { %v996_v22 = vpop.f32.mrb[0].mxu1 }
 0x28a   : > { %v998_v23 = vpop.f32.mrb[1].mxu1 }
 0x28b   : > { %v1000_v24 = vpop.f32.mrb[2].mxu1 }
 0x28c   : > { %v1035_v26 = vpack.c.bf16 %v1000_v24, %v996_v22  ;;  %v1002_v27 = vpop.f32.mrb[3].mxu1 }
 0x28d   : > { %v1036_v29 = vpack.c.bf16 %v1002_v27, %v998_v23 }
 0x28e   : > { %v1171_v30 = vadd.bf16 %v1372_v25, %v1035_v26  ;;  %v1501_v26 = vmov 1966171168  }
 0x28f   : > { %v1172_v31 = vadd.bf16 %v1372_v25, %v1036_v29  ;;  %v1195_v25 = vld [vmem:[%s1852_s7] sm:$0x1]  ;;  %v1246_v27 = vunpack.c.l.s4 %v1501_v26 }
 0x290   : > { %v1179_v36 = vmul.bf16 1009007652, %v1171_v30 }
 0x291   : > { %v1180_v38 = vmul.bf16 1009007652, %v1172_v31  ;;  %v1006_v39 = vpop.f32.mrb[4].mxu1  ;;  %v1247_v2 = vunpack.c.0.s8 %v1246_v27 }
 0x292   : > { %v1008_v40 = vpop.f32.mrb[5].mxu1  ;;  %v1187_v44 = vmax.bf16 %v1179_v36, %v1171_v30 }
 0x293   : > { %v1010_v41 = vpop.f32.mrb[6].mxu1  ;;  %v1188_v42 = vmax.bf16 %v1180_v38, %v1172_v31  ;;  %v1250_v35 = vsub.s32 %v1247_v2, %v1706_v34 }
 0x294   : > { %v1037_v45 = vpack.c.bf16 %v1010_v41, %v1006_v39  ;;  %v1012_v46 = vpop.f32.mrb[7].mxu1 }
 0x295   : > { %v1038_v51 = vpack.c.bf16 %v1012_v46, %v1008_v40  ;;  %1201 = vmatprep.subr.bf16.mxu0 %v1188_v42 }
 0x296   : > { %v1173_v52 = vadd.bf16 %v1373_v43, %v1037_v45  ;;  %1202 = vmatpush1.bf16.msra.mxu0 %v1187_v44 }
 0x297   : > { %v1174_v53 = vadd.bf16 %v1373_v43, %v1038_v51 }
 0x298   : > { %v1181_v56 = vmul.bf16 1009007652, %v1173_v52 }
 0x299   : > { %v1182_v57 = vmul.bf16 1009007652, %v1174_v53  ;;  %v1016_v58 = vpop.f32.mrb[8].mxu1 }
 0x29a   : > { %v1018_v59 = vpop.f32.mrb[9].mxu1  ;;  %v1189_v63 = vmax.bf16 %v1181_v56, %v1173_v52 }
 0x29b   : > { %v1020_v60 = vpop.f32.mrb[10].mxu1  ;;  %v1190_v61 = vmax.bf16 %v1182_v57, %v1174_v53 }
 0x29c   : > { %v1039_v0 = vpack.c.bf16 %v1020_v60, %v1016_v58  ;;  %v1022_v50 = vpop.f32.mrb[11].mxu1 }
 0x29d   : > { %v1040_v4 = vpack.c.bf16 %v1022_v50, %v1018_v59  ;;  %1203 = vmatprep.subr.bf16.mxu0 %v1190_v61 }
 0x29e   : > { %v1175_v5 = vadd.bf16 %v1374_v62, %v1039_v0  ;;  %1204 = vmatpush1.bf16.msra.mxu0 %v1189_v63 }
 0x29f   : > { %v1176_v6 = vadd.bf16 %v1374_v62, %v1040_v4 }
 0x2a0   : > { %v1183_v9 = vmul.bf16 1009007652, %v1175_v5 }
 0x2a1   : > { %v1184_v10 = vmul.bf16 1009007652, %v1176_v6  ;;  %v1026_v11 = vpop.f32.mrb[12].mxu1 }
 0x2a2   : > { %v1028_v12 = vpop.f32.mrb[13].mxu1  ;;  %v1191_v16 = vmax.bf16 %v1183_v9, %v1175_v5 }
 0x2a3   : > { %v1030_v13 = vpop.f32.mrb[14].mxu1  ;;  %v1192_v14 = vmax.bf16 %v1184_v10, %v1176_v6 }
 0x2a4   : > { %v1041_v17 = vpack.c.bf16 %v1030_v13, %v1026_v11  ;;  %v1032_v18 = vpop.f32.mrb[15].mxu1 }
 0x2a5   : > { %v1042_v19 = vpack.c.bf16 %v1032_v18, %v1028_v12  ;;  %1205 = vmatprep.subr.bf16.mxu0 %v1192_v14 }
 0x2a6   : > { %v1177_v20 = vadd.bf16 %v1375_v15, %v1041_v17  ;;  %1206 = vmatpush1.bf16.msra.mxu0 %v1191_v16 }
 0x2a7   : > { %v1178_v21 = vadd.bf16 %v1375_v15, %v1042_v19 }
 0x2a8   : > { %v1185_v22 = vmul.bf16 1009007652, %v1177_v20 }
 0x2a9   : > { %v1186_v23 = vmul.bf16 1009007652, %v1178_v21 }
 0x2aa   : > { %v1193_v49 = vmax.bf16 %v1185_v22, %v1177_v20 }
 0x2ab   : > { %v1194_v24 = vmax.bf16 %v1186_v23, %v1178_v21 }
 0x2ad   : > { %1207 = vmatprep.subr.bf16.mxu0 %v1194_v24 }
 0x2ae   : > { %1208 = vmatpush1.bf16.msra.mxu0 %v1193_v49 }
 0x2b1   : > { %1376 = vmatmul.mubr.msk.bf16.vlgmr.msra.gmra.mrb[16].mxu0 %vm676_vm0, %v1195_v25 }
 0x384   : > { %v1235_v29 = vpop.f32.mrb[16].mxu0 }
 0x385   : > { %v1236_v30 = vadd.f32 %v1235_v29, %v1197_v28  ;;  %v1237_v31 = vpop.f32.mrb[17].mxu0 }
 0x386   : > { %v1238_v32 = vadd.f32 %v1237_v31, %v1197_v28  ;;  %v1239_v36 = vpop.f32.mrb[18].mxu0 }
 0x387   : > { %v1240_v38 = vpop.f32.mrb[19].mxu0 }
 0x388   : > { %v1244_v39 = vcombine.low %v1236_v30, %v1238_v32 }
 0x38a   : > { %v1251_v40 = vrot.slane %v1244_v39, %v1250_v35 }
 0x38c   : > { %v1258_v41 = vrot.slane %v1251_v40, %v1250_v35 }
 0x38e   : > { %v1260_v42 = vadd.f32 %v1258_v41, %v1713_v37 }
 0x390   : > { %1265 = vst.msk [vmem:[%s325_s18] sm:$0x3] %vm1263_vm1, %v1260_v42 }
 0x391   : > { %1448 = shalt.err (!%p1445_p3)
}
 0x392   : > { %s1449_s30 = scalar_lea.hbm %s1803_s25, 32  ;;  %s1453_s17 = scalar_lea.hbm %s1854_s9, 64 }
 0x393   : > { %p1450_p4 = scmp.ne.s32.totalorder %s1803_s25, %s1449_s30  ;;  %p1454_p9 = scmp.lt.u32.totalorder %s1803_s25, %s1854_s9 }
 0x394   : > { %p1455_p10 = scmp.lt.u32.totalorder %s1453_s17, %s1449_s30  ;;  %p1457_p12 = scmp.lt.u32.totalorder %s1449_s30, %s1803_s25 }
 0x395   : > { %p1451_p7 = pnand %p1450_p4, %p1594_p5 }
 0x396   : > { %p1456_p11 = por %p1455_p10, %p1454_p9 }
 0x397   : > { %p1452_p8 = pneg %p1451_p7 }
 0x398   : > { %p1458_p13 = por %p1457_p12, %p1456_p11 }
 0x39a   : > { %p1459_p0 = pnand %p1458_p13, %p1452_p8 }
 0x39c   : > { %1462 = shalt.err (!%p1459_p0)
}
 0x39d   : > { %1383 = dma.vmem_to_hbm [thread:$0]  (%p1594_p5), %s1805_s22, 32, %s1803_s25, %s1267_s26  }
 0x39e PF: > { %p1389_p1 = scmp.ge.s32.totalorder %s1497_s14, 2  ;;  %s1293_s24 = sand.u32 1, %s1485_s11  }
 0x39f   : > { %s1294_s8 = scalar_lea.sflag [#allocation4], %s1293_s24 }
 0x3a0   : > { %p1386_p2 = pnand %p1389_p1, %p1598_p6 }
 0x3a2   : > { %1480 = dma.done.wait (!%p1386_p2), %s1294_s8, 32  }
 0x3a3   : > { %1482 = vsyncadd (!%p1386_p2), %s1294_s8, 4294967264  ;;  %p20_p3 = scmp.ge.s32.totalorder %s1581_s16, 4   ;;  %s1857_s11 = smov %s1489_s12 }
 0x3a4   : > { %s1858_s12 = smov %s1493_s13  ;;  %s1859_s13 = smov %s1592_s19 }
 0x3a5   : > { %s1860_s14 = smov %s1581_s16  ;;  %22 = sbr.rel (!%p20_p3) target bundleno = 5 (0x5), region = 91 }
 0x3ac   :  { %1299 = vsyncpa [#allocation4], 1 }
 0x3ad   :  { %1301 = vsyncpa [#allocation4 + $0x1], 1 }

</bundles_post_ra>
